<compile_context>
chip_gen: v7x
topology: tpu7x:2x2x1
jax: 0.10.0
libtpu: 0.0.40
codegen_flags: <defaults>
</compile_context>

<pallas_src>
import functools

import jax
import jax.numpy as jnp
from jax.experimental import pallas as pl
from jax.experimental.pallas import tpu as pltpu

LANE = 128  # pad the class dim to a full lane width for lane-dense stores


def _mlp_head_kernel(x_ref, w1_ref, b1_ref, w23_ref, b23_ref, o_ref):
    # x: [TB, 512] bf16, w1: [512, 256] bf16, w23: [256, C_pad] bf16,
    # biases f32 [1, 256] / [1, C_pad]; epilogues run on the f32 accumulator.
    h = jnp.dot(x_ref[...], w1_ref[...], preferred_element_type=jnp.float32)
    h = jnp.maximum(h + b1_ref[...], 0.0)                 # bias + ReLU in f32
    h = h.astype(w23_ref.dtype)                           # back to bf16 for MXU
    o = jnp.dot(h, w23_ref[...], preferred_element_type=jnp.float32)
    o_ref[...] = (o + b23_ref[...]).astype(o_ref.dtype)


@functools.partial(jax.jit, static_argnames=("numclass", "tb"))
def mlp_head(x, w1, b1, w23, b23, *, numclass, tb=512):
    """x: [B, 512] float features.  Returns logits [B, numclass] in f32."""
    B = x.shape[0]
    c_pad = w23.shape[1]
    b_pad = ((B + tb - 1) // tb) * tb

    x_bf16 = x.astype(jnp.bfloat16)
    if b_pad != B:
        x_bf16 = jnp.pad(x_bf16, ((0, b_pad - B), (0, 0)))

    cost = pl.CostEstimate(
        flops=2 * b_pad * 512 * 256 + 2 * b_pad * 256 * c_pad,
        transcendentals=0,
        bytes_accessed=(b_pad * 512 * 2            # x (bf16)
                        + 512 * 256 * 2            # w1 (bf16)
                        + 256 * c_pad * 2          # w23 (bf16)
                        + (256 + c_pad) * 4        # biases (f32)
                        + b_pad * c_pad * 4),      # output (f32)
    )

    out = pl.pallas_call(
        _mlp_head_kernel,
        out_shape=jax.ShapeDtypeStruct((b_pad, c_pad), jnp.float32),
        grid=(b_pad // tb,),
        in_specs=[
            pl.BlockSpec((tb, 512), lambda i: (i, 0)),     # batch tile of x
            pl.BlockSpec((512, 256), lambda i: (0, 0)),    # w1, VMEM-resident
            pl.BlockSpec((1, 256), lambda i: (0, 0)),      # b1
            pl.BlockSpec((256, c_pad), lambda i: (0, 0)),  # fused w23
            pl.BlockSpec((1, c_pad), lambda i: (0, 0)),    # fused b23
        ],
        out_specs=pl.BlockSpec((tb, c_pad), lambda i: (i, 0)),
        compiler_params=pltpu.CompilerParams(
            dimension_semantics=("parallel",),
            vmem_limit_bytes=16 << 20,
        ),
        cost_estimate=cost,
    )(x_bf16, w1, b1, w23, b23)

    return out[:B, :numclass]


def init_params(key, numclass):
    """Deterministic init in PyTorch nn.Linear layout (W is [out, in])."""
    ks = jax.random.split(key, 6)
    w1_t = jax.random.normal(ks[0], (256, 512), jnp.float32) * 0.02   # hidden[0]
    b1 = jax.random.normal(ks[1], (256,), jnp.float32) * 0.02
    w2_t = jax.random.normal(ks[2], (128, 256), jnp.float32) * 0.02   # hidden[2]
    b2 = jax.random.normal(ks[3], (128,), jnp.float32) * 0.02
    w3_t = jax.random.normal(ks[4], (numclass, 128), jnp.float32) * 0.02  # fc
    b3 = jax.random.normal(ks[5], (numclass,), jnp.float32) * 0.02
    return w1_t, b1, w2_t, b2, w3_t, b3


def prepare_params(w1_t, b1, w2_t, b2, w3_t, b3):
    """Fuse Linear(256,128)+fc, pad classes to a lane multiple, cast to kernel layout."""
    w1 = w1_t.T                                   # [512, 256]
    w2 = w2_t.T                                   # [256, 128]
    w3 = w3_t.T                                   # [128, C]
    C = w3.shape[1]
    c_pad = ((C + LANE - 1) // LANE) * LANE
    w23 = w2 @ w3                                 # [256, C]  (no activation between)
    b23 = b2 @ w3 + b3                            # [C]
    w23 = jnp.pad(w23, ((0, 0), (0, c_pad - C)))
    b23 = jnp.pad(b23, (0, c_pad - C))
    return (w1.astype(jnp.bfloat16),
            b1.reshape(1, -1).astype(jnp.float32),
            w23.astype(jnp.bfloat16),
            b23.reshape(1, -1).astype(jnp.float32))


def reference(x, w1_t, b1, w2_t, b2, w3_t, b3):
    """Unfused f32 reference matching the PyTorch forward exactly."""
    h = jnp.maximum(x @ w1_t.T + b1, 0.0)
    h = h @ w2_t.T + b2
    return h @ w3_t.T + b3


if __name__ == "__main__":
    key = jax.random.PRNGKey(0)
    kx, kp = jax.random.split(key)
    B, numclass = 200, 10
    # Stand-in for feature_extractor(input): already-extracted 512-d features.
    x = jax.random.normal(kx, (B, 512), jnp.float32)

    torch_params = init_params(kp, numclass)
    kernel_params = prepare_params(*torch_params)

    # tb=128 on the small test so the grid has >1 step and the padding path runs.
    out = mlp_head(x, *kernel_params, numclass=numclass, tb=128)
    out = jax.block_until_ready(out)

    ref = reference(x, *torch_params)
    assert out.shape == (B, numclass), out.shape
    max_err = float(jnp.max(jnp.abs(out - ref)))
    # bf16 inputs + fused w2@w3 reorder rounding -> looser tolerance vs f32 reference.
    assert jnp.allclose(out, ref, atol=1e-2, rtol=1e-2), max_err
    print("KERNEL_OK")
</pallas_src>

<mosaic_0001>
module attributes {stable_mosaic.version = 11 : i64} {
  func.func @_mlp_head_kernel(%arg0: i32, %arg1: memref<128x512xbf16, #tpu.memory_space<vmem>>, %arg2: memref<512x256xbf16, #tpu.memory_space<vmem>>, %arg3: memref<1x256xf32, #tpu.memory_space<vmem>>, %arg4: memref<256x128xbf16, #tpu.memory_space<vmem>>, %arg5: memref<1x128xf32, #tpu.memory_space<vmem>>, %arg6: memref<128x128xf32, #tpu.memory_space<vmem>>) attributes {dimension_semantics = [#tpu.dimension_semantics<parallel>], iteration_bounds = array<i64: 2>, scalar_prefetch = 0 : i64, scratch_operands = 0 : i64, tpu.core_type = #tpu.core_type<tc>, window_params = [{transform_indices = @transform_0, window_bounds = array<i64: 128, 512>}, {pipeline_mode = #tpu.pipeline_mode<synchronous>, transform_indices = @transform_1, window_bounds = array<i64: 512, 256>}, {pipeline_mode = #tpu.pipeline_mode<synchronous>, transform_indices = @transform_2, window_bounds = array<i64: 1, 256>}, {pipeline_mode = #tpu.pipeline_mode<synchronous>, transform_indices = @transform_3, window_bounds = array<i64: 256, 128>}, {pipeline_mode = #tpu.pipeline_mode<synchronous>, transform_indices = @transform_4, window_bounds = array<i64: 1, 128>}, {transform_indices = @transform_5, window_bounds = array<i64: 128, 128>}]} {
    %c0 = arith.constant 0 : index
    %c0_0 = arith.constant 0 : index
    %0 = vector.load %arg1[%c0, %c0_0] : memref<128x512xbf16, #tpu.memory_space<vmem>>, vector<128x512xbf16>
    %c0_1 = arith.constant 0 : index
    %c0_2 = arith.constant 0 : index
    %1 = vector.load %arg2[%c0_1, %c0_2] : memref<512x256xbf16, #tpu.memory_space<vmem>>, vector<512x256xbf16>
    %cst = arith.constant dense<0.000000e+00> : vector<128x256xf32>
    %2 = tpu.matmul %0, %1, %cst {dimension_numbers = #tpu.dot_dimension_numbers<[1], [0], [0], [1], [0, 0, 1, 1], [], []>} : vector<128x512xbf16>, vector<512x256xbf16>, vector<128x256xf32> -> vector<128x256xf32>
    %c0_3 = arith.constant 0 : index
    %c0_4 = arith.constant 0 : index
    %3 = vector.load %arg3[%c0_3, %c0_4] : memref<1x256xf32, #tpu.memory_space<vmem>>, vector<1x256xf32>
    %4 = vector.broadcast %3 : vector<1x256xf32> to vector<128x256xf32>
    %5 = arith.addf %2, %4 : vector<128x256xf32>
    %cst_5 = arith.constant 0.000000e+00 : f32
    %6 = vector.broadcast %cst_5 : f32 to vector<128x256xf32>
    %7 = arith.maximumf %5, %6 : vector<128x256xf32>
    %8 = arith.truncf %7 : vector<128x256xf32> to vector<128x256xbf16>
    %c0_6 = arith.constant 0 : index
    %c0_7 = arith.constant 0 : index
    %9 = vector.load %arg4[%c0_6, %c0_7] : memref<256x128xbf16, #tpu.memory_space<vmem>>, vector<256x128xbf16>
    %cst_8 = arith.constant dense<0.000000e+00> : vector<128x128xf32>
    %10 = tpu.matmul %8, %9, %cst_8 {dimension_numbers = #tpu.dot_dimension_numbers<[1], [0], [0], [1], [0, 0, 1, 1], [], []>} : vector<128x256xbf16>, vector<256x128xbf16>, vector<128x128xf32> -> vector<128x128xf32>
    %c0_9 = arith.constant 0 : index
    %c0_10 = arith.constant 0 : index
    %11 = vector.load %arg5[%c0_9, %c0_10] : memref<1x128xf32, #tpu.memory_space<vmem>>, vector<1x128xf32>
    %12 = vector.broadcast %11 : vector<1x128xf32> to vector<128x128xf32>
    %13 = arith.addf %10, %12 : vector<128x128xf32>
    %c0_11 = arith.constant 0 : index
    %c0_12 = arith.constant 0 : index
    %14 = vector.load %arg6[%c0_11, %c0_12] : memref<128x128xf32, #tpu.memory_space<vmem>>, vector<128x128xf32>
    tpu.vector_store %arg6[%c0_11, %c0_12], %13 {strides = array<i32>} : memref<128x128xf32, #tpu.memory_space<vmem>>, vector<128x128xf32>,
    return
  }
  func.func @transform_0(%arg0: i32) -> (i32, i32) {
    %c0_i32 = arith.constant 0 : i32
    %c0_i32_0 = arith.constant 0 : i32
    return %arg0, %c0_i32 : i32, i32
  }
  func.func @transform_1(%arg0: i32) -> (i32, i32) {
    %c0_i32 = arith.constant 0 : i32
    %c0_i32_0 = arith.constant 0 : i32
    %c0_i32_1 = arith.constant 0 : i32
    return %c0_i32, %c0_i32_0 : i32, i32
  }
  func.func @transform_2(%arg0: i32) -> (i32, i32) {
    %c0_i32 = arith.constant 0 : i32
    %c0_i32_0 = arith.constant 0 : i32
    %c0_i32_1 = arith.constant 0 : i32
    return %c0_i32, %c0_i32_0 : i32, i32
  }
  func.func @transform_3(%arg0: i32) -> (i32, i32) {
    %c0_i32 = arith.constant 0 : i32
    %c0_i32_0 = arith.constant 0 : i32
    %c0_i32_1 = arith.constant 0 : i32
    return %c0_i32, %c0_i32_0 : i32, i32
  }
  func.func @transform_4(%arg0: i32) -> (i32, i32) {
    %c0_i32 = arith.constant 0 : i32
    %c0_i32_0 = arith.constant 0 : i32
    %c0_i32_1 = arith.constant 0 : i32
    return %c0_i32, %c0_i32_0 : i32, i32
  }
  func.func @transform_5(%arg0: i32) -> (i32, i32) {
    %c0_i32 = arith.constant 0 : i32
    %c0_i32_0 = arith.constant 0 : i32
    return %arg0, %c0_i32 : i32, i32
  }
}

</mosaic_0001>

<bundles_post_ra>
// kernel: mlp_head.1
= control target key start
LH: loop header
LB: loop body
LE: loop exit
PB: predicated region body
PF: predicated region fallthrough
CT: control target
= control target key end

     0   :  { %s1890_s18 = smov 0   ;;  %s2415_s0 = inlined_call_operand.vmem [shape: bf16[256,512], index: 0, kind: input, shape index: {}]   ;;  %s2416_s1 = inlined_call_operand.vmem [shape: bf16[512,256], index: 1, kind: input, shape index: {}]   ;;  %s2417_s2 = inlined_call_operand.vmem [shape: f32[1,256], index: 2, kind: input, shape index: {}]   ;;  %s2418_s3 = inlined_call_operand.vmem [shape: bf16[256,128], index: 3, kind: input, shape index: {}]   ;;  %s2419_s4 = inlined_call_operand.vmem [shape: f32[1,128], index: 4, kind: input, shape index: {}]   ;;  %s2420_s5 = inlined_call_operand.vmem [shape: f32[256,128], index: 5, kind: output, shape index: {}]  }
   0x1 LB: > { %s1398_s19 = sadd.s32 4294967295, %s1858_s18   ;;  %p1402_p0 = scmp.ge.s32.totalorder %s1858_s18, 1  ;;  %s1858_s18 = sphi %s1890_s18, %s15_s18  }
   0x2   : > { %p189_p1 = scmp.lt.s32.totalorder %s1858_s18, 3 }
   0x4   : > { %p190_p2 = pnand %p1402_p0, %p189_p1 }
   0x5   : > { %v1692_v0 = vld [vmem:[%s2416_s1 + $0x4] ss:$8 sps:$4 sm:$0xff] (!%p190_p2)   ;;  %v1694_v1 = vld [vmem:[%s2416_s1] ss:$8 sps:$4 sm:$0xff] (!%p190_p2)   ;;  %v1695_v2 = vld [vmem:[%s2416_s1 + $0x14] ss:$8 sps:$4 sm:$0xff] (!%p190_p2)  }
   0x6   : > { %193 = sbr.rel (%p190_p2) target bundleno = 632 (0x278), region = 40  ;;  %820 = vmatprep.subr.bf16.mxu0 (!%p190_p2), %v1692_v0  ;;  %v1697_v3 = vld [vmem:[%s2416_s1 + $0x10] ss:$8 sps:$4 sm:$0xff] (!%p190_p2)   ;;  %v1698_v4 = vld [vmem:[%s2416_s1 + $0x24] ss:$8 sps:$4 sm:$0xff] (!%p190_p2)   ;;  %s1403_s25 = sshll.u32 (!%p190_p2), %s1398_s19, 4 }
   0x7   : > { %821 = vmatpush1.bf16.msra.mxu0 (!%p190_p2), %v1694_v1  ;;  %v1700_v5 = vld [vmem:[%s2416_s1 + $0x20] ss:$8 sps:$4 sm:$0xff] (!%p190_p2)   ;;  %v1701_v6 = vld [vmem:[%s2416_s1 + $0x34] ss:$8 sps:$4 sm:$0xff] (!%p190_p2)   ;;  %v1703_v7 = vld [vmem:[%s2416_s1 + $0x30] ss:$8 sps:$4 sm:$0xff] (!%p190_p2)  }
   0x8   : > { %822 = vmatprep.subr.bf16.mxu0 (!%p190_p2), %v1695_v2  ;;  %v1704_v8 = vld [vmem:[%s2416_s1 + $0x44] ss:$8 sps:$4 sm:$0xff] (!%p190_p2)   ;;  %v1933_v10 = vld [vmem:[%s2416_s1 + $0x100] ss:$8 sps:$4 sm:$0xff] (!%p190_p2)   ;;  %v1943_v12 = vld [vmem:[%s2416_s1 + $0x114] ss:$8 sps:$4 sm:$0xff] (!%p190_p2)  }
   0x9   : > { %v1928_v9 = vld [vmem:[%s2416_s1 + $0x104] ss:$8 sps:$4 sm:$0xff] (!%p190_p2)   ;;  %v1706_v11 = vld [vmem:[%s2416_s1 + $0x40] ss:$8 sps:$4 sm:$0xff] (!%p190_p2)   ;;  %v1948_v13 = vld [vmem:[%s2416_s1 + $0x110] ss:$8 sps:$4 sm:$0xff] (!%p190_p2)  }
   0xa   : > { %1588 = vmatprep.subr.bf16.mxu1 (!%p190_p2), %v1928_v9  ;;  %v1707_v14 = vld [vmem:[%s2416_s1 + $0x54] ss:$8 sps:$4 sm:$0xff] (!%p190_p2)   ;;  %v1709_v15 = vld [vmem:[%s2416_s1 + $0x50] ss:$8 sps:$4 sm:$0xff] (!%p190_p2)   ;;  %v1960_v16 = vld [vmem:[%s2416_s1 + $0x124] ss:$8 sps:$4 sm:$0xff] (!%p190_p2)  }
   0xb   : > { %823 = vmatpush1.bf16.msra.mxu0 (!%p190_p2), %v1697_v3  ;;  %1604 = vmatpush1.bf16.msra.mxu1 (!%p190_p2), %v1933_v10  ;;  %p219_p3 = scmp.lt.s32.totalorder (!%p190_p2), %s1403_s25, 31  ;;  %v1710_v17 = vld [vmem:[%s2416_s1 + $0x64] ss:$8 sps:$4 sm:$0xff] (!%p190_p2)   ;;  %v1969_v18 = vld [vmem:[%s2416_s1 + $0x120] ss:$8 sps:$4 sm:$0xff] (!%p190_p2)  }
   0xc   : > { %824 = vmatprep.subr.bf16.mxu0 (!%p190_p2), %v1698_v4  ;;  %1589 = vmatprep.subr.bf16.mxu1 (!%p190_p2), %v1943_v12  ;;  %v1975_v19 = vld [vmem:[%s2416_s1 + $0x134] ss:$8 sps:$4 sm:$0xff] (!%p190_p2)   ;;  %v1712_v20 = vld [vmem:[%s2416_s1 + $0x60] ss:$8 sps:$4 sm:$0xff] (!%p190_p2)   ;;  %v1989_v22 = vld [vmem:[%s2416_s1 + $0x130] ss:$8 sps:$4 sm:$0xff] (!%p190_p2)  }
   0xd   : > { %s2422_s25 = smov (!%p219_p3, %s1403_s25), 31  ;;  %v1713_v21 = vld [vmem:[%s2416_s1 + $0x74] ss:$8 sps:$4 sm:$0xff]   ;;  %v1995_v23 = vld [vmem:[%s2416_s1 + $0x144] ss:$8 sps:$4 sm:$0xff]  }
   0xe   : > { %v1715_v24 = vld [vmem:[%s2416_s1 + $0x70] ss:$8 sps:$4 sm:$0xff]   ;;  %s1523_s24 = sshll.u32 %s2422_s25, 4  ;;  %v1716_v25 = vld [vmem:[%s2416_s1 + $0x84] ss:$8 sps:$4 sm:$0xff]   ;;  %s1407_s28 = sshll.u32 %s2422_s25, 3 }
   0xf   : > { %825 = vmatpush1.bf16.msra.mxu0 %v1700_v5  ;;  %1605 = vmatpush1.bf16.msra.mxu1 %v1948_v13  ;;  %v2008_v26 = vld [vmem:[%s2416_s1 + $0x140] ss:$8 sps:$4 sm:$0xff]   ;;  %v2014_v27 = vld [vmem:[%s2416_s1 + $0x154] ss:$8 sps:$4 sm:$0xff]   ;;  %s2019_s8 = scalar_lea.vmem %s2415_s0, %s1523_s24  ;;  %v2031_v30 = vld [vmem:[%s2416_s1 + $0x150] ss:$8 sps:$4 sm:$0xff]   ;;  %s2378_s19 = scalar_lea.vmem %s2420_s5, %s1407_s28 }
  0x10   : > { %826 = vmatprep.subr.bf16.mxu0 %v1701_v6  ;;  %1590 = vmatprep.subr.bf16.mxu1 %v1960_v16  ;;  %v1718_v28 = vld [vmem:[%s2416_s1 + $0x80] ss:$8 sps:$4 sm:$0xff]   ;;  %v1722_v29 = vld [vmem:[%s2416_s1 + $0x94] ss:$8 sps:$4 sm:$0xff]   ;;  %v2037_v31 = vld [vmem:[%s2416_s1 + $0x164] ss:$8 sps:$4 sm:$0xff]  }
  0x11   : > { %v1765_v32 = vld [vmem:[%s2019_s8 + $0x4] ss:$16 sps:$4 sm:$0xff]   ;;  %v1724_v33 = vld [vmem:[%s2416_s1 + $0x90] ss:$8 sps:$4 sm:$0xff]   ;;  %v2047_v34 = vld [vmem:[%s2416_s1 + $0x160] ss:$8 sps:$4 sm:$0xff]  }
  0x12   : > { %852 = vmatprep.mubr.bf16.mxu0 %v1765_v32  ;;  %v1728_v35 = vld [vmem:[%s2416_s1 + $0xa4] ss:$8 sps:$4 sm:$0xff]   ;;  %v2056_v36 = vld [vmem:[%s2416_s1 + $0x174] ss:$8 sps:$4 sm:$0xff]   ;;  %v1730_v37 = vld [vmem:[%s2416_s1 + $0xa0] ss:$8 sps:$4 sm:$0xff]  }
  0x13   : > { %827 = vmatpush1.bf16.msra.mxu0 %v1703_v7  ;;  %1606 = vmatpush1.bf16.msra.mxu1 %v1969_v18  ;;  %v2065_v38 = vld [vmem:[%s2416_s1 + $0x170] ss:$8 sps:$4 sm:$0xff]   ;;  %v1734_v39 = vld [vmem:[%s2416_s1 + $0xb4] ss:$8 sps:$4 sm:$0xff]   ;;  %v2074_v40 = vld [vmem:[%s2416_s1 + $0x184] ss:$8 sps:$4 sm:$0xff]  }
  0x14   : > { %828 = vmatprep.subr.bf16.mxu0 %v1704_v8  ;;  %1591 = vmatprep.subr.bf16.mxu1 %v1975_v19  ;;  %v1736_v41 = vld [vmem:[%s2416_s1 + $0xb0] ss:$8 sps:$4 sm:$0xff]   ;;  %v2083_v42 = vld [vmem:[%s2416_s1 + $0x180] ss:$8 sps:$4 sm:$0xff]   ;;  %v1740_v43 = vld [vmem:[%s2416_s1 + $0xc4] ss:$8 sps:$4 sm:$0xff]  }
  0x15   : > { %v2092_v44 = vld [vmem:[%s2416_s1 + $0x194] ss:$8 sps:$4 sm:$0xff]   ;;  %v1742_v45 = vld [vmem:[%s2416_s1 + $0xc0] ss:$8 sps:$4 sm:$0xff]   ;;  %v2101_v46 = vld [vmem:[%s2416_s1 + $0x190] ss:$8 sps:$4 sm:$0xff]  }
  0x16   : > { %v1746_v47 = vld [vmem:[%s2416_s1 + $0xd4] ss:$8 sps:$4 sm:$0xff]   ;;  %v2110_v48 = vld [vmem:[%s2416_s1 + $0x1a4] ss:$8 sps:$4 sm:$0xff]   ;;  %v1748_v49 = vld [vmem:[%s2416_s1 + $0xd0] ss:$8 sps:$4 sm:$0xff]  }
  0x17   : > { %829 = vmatpush1.bf16.msra.mxu0 %v1706_v11  ;;  %1607 = vmatpush1.bf16.msra.mxu1 %v1989_v22  ;;  %v1805_v50 = vld [vmem:[%s2019_s8 + $0x8c] ss:$16 sps:$4 sm:$0xff]   ;;  %v2123_v52 = vld [vmem:[%s2416_s1 + $0x1a0] ss:$8 sps:$4 sm:$0xff]   ;;  %v2141_v56 = vld [vmem:[%s2416_s1 + $0x1b0] ss:$8 sps:$4 sm:$0xff]  }
  0x18   : > { %830 = vmatprep.subr.bf16.mxu0 %v1707_v14  ;;  %1592 = vmatprep.subr.bf16.mxu1 %v1995_v23  ;;  %v1752_v51 = vld [vmem:[%s2416_s1 + $0xe4] ss:$8 sps:$4 sm:$0xff]   ;;  %v2129_v53 = vld [vmem:[%s2416_s1 + $0x1b4] ss:$8 sps:$4 sm:$0xff]   ;;  %v1754_v54 = vld [vmem:[%s2416_s1 + $0xe0] ss:$8 sps:$4 sm:$0xff]  }
  0x19   : > { %1005 = vmatprep.mubr.bf16.mxu1 %v1805_v50  ;;  %v1758_v55 = vld [vmem:[%s2416_s1 + $0xf4] ss:$8 sps:$4 sm:$0xff]   ;;  %v2147_v57 = vld [vmem:[%s2416_s1 + $0x1c4] ss:$8 sps:$4 sm:$0xff]   ;;  %v1760_v58 = vld [vmem:[%s2416_s1 + $0xf0] ss:$8 sps:$4 sm:$0xff]  }
  0x1a   : > { %v2156_v59 = vld [vmem:[%s2416_s1 + $0x1c0] ss:$8 sps:$4 sm:$0xff]   ;;  %v2162_v60 = vld [vmem:[%s2416_s1 + $0x1d4] ss:$8 sps:$4 sm:$0xff]   ;;  %v2170_v63 = vld [vmem:[%s2416_s1 + $0x1d0] ss:$8 sps:$4 sm:$0xff]  }
  0x1b   : > { %831 = vmatpush1.bf16.msra.mxu0 %v1709_v15  ;;  %1608 = vmatpush1.bf16.msra.mxu1 %v2008_v26  ;;  %v1763_v61 = vld [vmem:[%s2019_s8] ss:$16 sps:$4 sm:$0xff]   ;;  %v1772_v62 = vld [vmem:[%s2019_s8 + $0x24] ss:$16 sps:$4 sm:$0xff]   ;;  %v1803_v6 = vld [vmem:[%s2019_s8 + $0x88] ss:$16 sps:$4 sm:$0xff]  }
  0x1c   : > { %832 = vmatprep.subr.bf16.mxu0 %v1710_v17  ;;  %1593 = vmatprep.subr.bf16.mxu1 %v2014_v27  ;;  %v2177_v0 = vld [vmem:[%s2416_s1 + $0x1e4] ss:$8 sps:$4 sm:$0xff]   ;;  %v2182_v1 = vld [vmem:[%s2416_s1 + $0x1e0] ss:$8 sps:$4 sm:$0xff]   ;;  %v2188_v2 = vld [vmem:[%s2416_s1 + $0x1f4] ss:$8 sps:$4 sm:$0xff]  }
  0x1d   : > { %v1775_v3 = vld [vmem:[%s2019_s8 + $0x20] ss:$16 sps:$4 sm:$0xff]   ;;  %v1781_v4 = vld [vmem:[%s2019_s8 + $0x44] ss:$16 sps:$4 sm:$0xff]   ;;  %v1809_v7 = vld [vmem:[%s2019_s8 + $0xac] ss:$16 sps:$4 sm:$0xff]  }
  0x1e   : > { %v2198_v5 = vld [vmem:[%s2416_s1 + $0x1f0] ss:$8 sps:$4 sm:$0xff]   ;;  %v1815_v11 = vld [vmem:[%s2019_s8 + $0xcc] ss:$16 sps:$4 sm:$0xff]   ;;  %v1806_v17 = vld [vmem:[%s2019_s8 + $0xa4] ss:$16 sps:$4 sm:$0xff]  }
  0x1f   : > { %833 = vmatpush1.bf16.msra.mxu0 %v1712_v20  ;;  %1609 = vmatpush1.bf16.msra.mxu1 %v2031_v30  ;;  %v1784_v8 = vld [vmem:[%s2019_s8 + $0x40] ss:$16 sps:$4 sm:$0xff]   ;;  %v1817_v14 = vld [vmem:[%s2019_s8 + $0xc8] ss:$16 sps:$4 sm:$0xff]   ;;  %v1821_v15 = vld [vmem:[%s2019_s8 + $0xec] ss:$16 sps:$4 sm:$0xff]  }
  0x20   : > { %834 = vmatprep.subr.bf16.mxu0 %v1713_v21  ;;  %1594 = vmatprep.subr.bf16.mxu1 %v2037_v31  ;;  %v1812_v20 = vld [vmem:[%s2019_s8 + $0xc4] ss:$16 sps:$4 sm:$0xff]   ;;  %v1814_v21 = vld [vmem:[%s2019_s8 + $0xc0] ss:$16 sps:$4 sm:$0xff]  }
  0x21   : > { %v1836_v32 = vld [vmem:[%s2418_s3 + $0x40] sm:$0xff]  }
  0x23   : > { %835 = vmatpush1.bf16.msra.mxu0 %v1715_v24  ;;  %1610 = vmatpush1.bf16.msra.mxu1 %v2047_v34  ;;  %v1826_v24 = vld [vmem:[%s2019_s8 + $0xc] ss:$16 sps:$4 sm:$0xff]  }
  0x24   : > { %836 = vmatprep.subr.bf16.mxu0 %v1716_v25  ;;  %1595 = vmatprep.subr.bf16.mxu1 %v2056_v36  ;;  %v1824_v25 = vld [vmem:[%s2019_s8 + $0x8] ss:$16 sps:$4 sm:$0xff]  }
  0x27   : > { %837 = vmatpush1.bf16.msra.mxu0 %v1718_v28  ;;  %1611 = vmatpush1.bf16.msra.mxu1 %v2065_v38  ;;  %v1830_v28 = vld [vmem:[%s2019_s8 + $0x4c] ss:$16 sps:$4 sm:$0xff]  }
  0x28   : > { %838 = vmatprep.subr.bf16.mxu0 %v1722_v29  ;;  %1596 = vmatprep.subr.bf16.mxu1 %v2074_v40  ;;  %v1832_v29 = vld [vmem:[%s2019_s8 + $0x48] ss:$16 sps:$4 sm:$0xff]  }
  0x2b   : > { %839 = vmatpush1.bf16.msra.mxu0 %v1724_v33  ;;  %1612 = vmatpush1.bf16.msra.mxu1 %v2083_v42  ;;  %v1837_v33 = vld [vmem:[%s2418_s3] sm:$0xff]  }
  0x2c   : > { %840 = vmatprep.subr.bf16.mxu0 %v1728_v35  ;;  %1597 = vmatprep.subr.bf16.mxu1 %v2092_v44  ;;  %v1839_v35 = vld [vmem:[%s2418_s3 + $0x8] sm:$0xff]  }
  0x2f   : > { %841 = vmatpush1.bf16.msra.mxu0 %v1730_v37  ;;  %1613 = vmatpush1.bf16.msra.mxu1 %v2101_v46  ;;  %v1841_v37 = vld [vmem:[%s2418_s3 + $0x10] sm:$0xff]  }
  0x30   : > { %842 = vmatprep.subr.bf16.mxu0 %v1734_v39  ;;  %1598 = vmatprep.subr.bf16.mxu1 %v2110_v48  ;;  %v1843_v39 = vld [vmem:[%s2418_s3 + $0x18] sm:$0xff]  }
  0x33   : > { %843 = vmatpush1.bf16.msra.mxu0 %v1736_v41  ;;  %1614 = vmatpush1.bf16.msra.mxu1 %v2123_v52  ;;  %v1845_v41 = vld [vmem:[%s2418_s3 + $0x20] sm:$0xff]  }
  0x34   : > { %844 = vmatprep.subr.bf16.mxu0 %v1740_v43  ;;  %1599 = vmatprep.subr.bf16.mxu1 %v2129_v53  ;;  %v1847_v43 = vld [vmem:[%s2418_s3 + $0x28] sm:$0xff]  }
  0x37   : > { %845 = vmatpush1.bf16.msra.mxu0 %v1742_v45  ;;  %1615 = vmatpush1.bf16.msra.mxu1 %v2141_v56  ;;  %v1849_v45 = vld [vmem:[%s2418_s3 + $0x30] sm:$0xff]  }
  0x38   : > { %846 = vmatprep.subr.bf16.mxu0 %v1746_v47  ;;  %1600 = vmatprep.subr.bf16.mxu1 %v2147_v57  ;;  %v1851_v47 = vld [vmem:[%s2418_s3 + $0x38] sm:$0xff]  }
  0x3b   : > { %847 = vmatpush1.bf16.msra.mxu0 %v1748_v49  ;;  %1616 = vmatpush1.bf16.msra.mxu1 %v2156_v59 }
  0x3c   : > { %848 = vmatprep.subr.bf16.mxu0 %v1752_v51  ;;  %1601 = vmatprep.subr.bf16.mxu1 %v2162_v60 }
  0x3f   : > { %849 = vmatpush1.bf16.msra.mxu0 %v1754_v54  ;;  %1617 = vmatpush1.bf16.msra.mxu1 %v2170_v63 }
  0x40   : > { %850 = vmatprep.subr.bf16.mxu0 %v1758_v55  ;;  %1602 = vmatprep.subr.bf16.mxu1 %v2177_v0 }
  0x43   : > { %851 = vmatpush1.bf16.msra.mxu0 %v1760_v58  ;;  %1618 = vmatpush1.bf16.msra.mxu1 %v2182_v1 }
  0x44   : > { %933 = vmatprep.subr.bf16.mxu0 %v1928_v9  ;;  %1603 = vmatprep.subr.bf16.mxu1 %v2188_v2  ;;  %v1790_v9 = vld [vmem:[%s2019_s8 + $0x64] ss:$16 sps:$4 sm:$0xff]  }
  0x46   : > { %853 = vmatmul.mubr.bf16.vlgmr.msra.gmra.mrb[0].mxu0 %v1763_v61 }
  0x47   : > { %934 = vmatpush1.bf16.msra.mxu0 %v1933_v10  ;;  %862 = vmatprep.mubr.bf16.mxu0 %v1772_v62  ;;  %v1811_v10 = vld [vmem:[%s2019_s8 + $0xa8] ss:$16 sps:$4 sm:$0xff]  }
  0x48   : > { %935 = vmatprep.subr.bf16.mxu0 %v1943_v12  ;;  %1619 = vmatpush1.bf16.msra.mxu1 %v2198_v5  ;;  %v1793_v12 = vld [vmem:[%s2019_s8 + $0x60] ss:$16 sps:$4 sm:$0xff]  }
  0x49   : > { %1524 = vmatprep.subr.bf16.mxu1 %v1836_v32 }
  0x4b   : > { %936 = vmatpush1.bf16.msra.mxu0 %v1948_v13  ;;  %1006 = vmatmul.mubr.bf16.vlgmr.msra.gmra.mrb[0].mxu1 %v1803_v6  ;;  %v1799_v13 = vld [vmem:[%s2019_s8 + $0x84] ss:$16 sps:$4 sm:$0xff]  }
  0x4c   : > { %937 = vmatprep.subr.bf16.mxu0 %v1960_v16  ;;  %1015 = vmatprep.mubr.bf16.mxu1 %v1809_v7  ;;  %v1802_v16 = vld [vmem:[%s2019_s8 + $0x80] ss:$16 sps:$4 sm:$0xff]  }
  0x4d   : > { %1525 = vmatpush3.bf16.msra.mxu1 %v1837_v33 }
  0x4e   : > { %863 = vmatmul.mubr.bf16.gmra.mrb[4].mxu0 %v1775_v3 }
  0x4f   : > { %938 = vmatpush1.bf16.msra.mxu0 %v1969_v18  ;;  %872 = vmatprep.mubr.bf16.mxu0 %v1781_v4  ;;  %v1823_v18 = vld [vmem:[%s2019_s8 + $0xe8] ss:$16 sps:$4 sm:$0xff]  }
  0x50   : > { %939 = vmatprep.subr.bf16.mxu0 %v1975_v19  ;;  %v1808_v19 = vld [vmem:[%s2019_s8 + $0xa0] ss:$16 sps:$4 sm:$0xff]  }
  0x53   : > { %940 = vmatpush1.bf16.msra.mxu0 %v1989_v22  ;;  %1016 = vmatmul.mubr.bf16.gmra.mrb[4].mxu1 %v1811_v10  ;;  %v1818_v22 = vld [vmem:[%s2019_s8 + $0xe4] ss:$16 sps:$4 sm:$0xff]  }
  0x54   : > { %941 = vmatprep.subr.bf16.mxu0 %v1995_v23  ;;  %1025 = vmatprep.mubr.bf16.mxu1 %v1815_v11  ;;  %v1820_v23 = vld [vmem:[%s2019_s8 + $0xe0] ss:$16 sps:$4 sm:$0xff]  }
  0x56   : > { %873 = vmatmul.mubr.bf16.gmra.mrb[8].mxu0 %v1784_v8 }
  0x57   : > { %942 = vmatpush1.bf16.msra.mxu0 %v2008_v26  ;;  %882 = vmatprep.mubr.bf16.mxu0 %v1790_v9  ;;  %v1827_v26 = vld [vmem:[%s2019_s8 + $0x2c] ss:$16 sps:$4 sm:$0xff]  }
  0x58   : > { %943 = vmatprep.subr.bf16.mxu0 %v2014_v27  ;;  %v1829_v27 = vld [vmem:[%s2019_s8 + $0x28] ss:$16 sps:$4 sm:$0xff]  }
  0x5b   : > { %944 = vmatpush1.bf16.msra.mxu0 %v2031_v30  ;;  %1026 = vmatmul.mubr.bf16.gmra.mrb[8].mxu1 %v1817_v14  ;;  %v1833_v30 = vld [vmem:[%s2019_s8 + $0x6c] ss:$16 sps:$4 sm:$0xff]  }
  0x5c   : > { %945 = vmatprep.subr.bf16.mxu0 %v2037_v31  ;;  %1035 = vmatprep.mubr.bf16.mxu1 %v1821_v15  ;;  %v1835_v31 = vld [vmem:[%s2019_s8 + $0x68] ss:$16 sps:$4 sm:$0xff]  }
  0x5e   : > { %883 = vmatmul.mubr.bf16.gmra.mrb[12].mxu0 %v1793_v12 }
  0x5f   : > { %946 = vmatpush1.bf16.msra.mxu0 %v2047_v34  ;;  %892 = vmatprep.mubr.bf16.mxu0 %v1799_v13  ;;  %v1838_v34 = vld [vmem:[%s2418_s3 + $0x48] sm:$0xff]  }
  0x60   : > { %947 = vmatprep.subr.bf16.mxu0 %v2056_v36  ;;  %1526 = vmatprep.subr.bf16.mxu1 %v1838_v34  ;;  %v1840_v36 = vld [vmem:[%s2418_s3 + $0x50] sm:$0xff]  }
  0x61   : > { %1527 = vmatpush3.bf16.msra.mxu1 %v1839_v35 }
  0x62   : > { %1528 = vmatprep.subr.bf16.mxu1 %v1840_v36 }
  0x63   : > { %948 = vmatpush1.bf16.msra.mxu0 %v2065_v38  ;;  %1036 = vmatmul.mubr.bf16.gmra.mrb[12].mxu1 %v1823_v18  ;;  %v1842_v38 = vld [vmem:[%s2418_s3 + $0x58] sm:$0xff]  }
  0x64   : > { %949 = vmatprep.subr.bf16.mxu0 %v2074_v40  ;;  %v1844_v40 = vld [vmem:[%s2418_s3 + $0x60] sm:$0xff]  }
  0x65   : > { %1529 = vmatpush3.bf16.msra.mxu1 %v1841_v37 }
  0x66   : > { %893 = vmatmul.mubr.bf16.gmra.mrb[16].mxu0 %v1802_v16  ;;  %1530 = vmatprep.subr.bf16.mxu1 %v1842_v38 }
  0x67   : > { %950 = vmatpush1.bf16.msra.mxu0 %v2083_v42  ;;  %902 = vmatprep.mubr.bf16.mxu0 %v1806_v17  ;;  %v1846_v42 = vld [vmem:[%s2418_s3 + $0x68] sm:$0xff]  }
  0x68   : > { %951 = vmatprep.subr.bf16.mxu0 %v2092_v44  ;;  %v1848_v44 = vld [vmem:[%s2418_s3 + $0x70] sm:$0xff]  }
  0x69   : > { %1531 = vmatpush3.bf16.msra.mxu1 %v1843_v39 }
  0x6a   : > { %1532 = vmatprep.subr.bf16.mxu1 %v1844_v40 }
  0x6b   : > { %952 = vmatpush1.bf16.msra.mxu0 %v2101_v46  ;;  %v1850_v46 = vld [vmem:[%s2418_s3 + $0x78] sm:$0xff]  }
  0x6c   : > { %953 = vmatprep.subr.bf16.mxu0 %v2110_v48 }
  0x6d   : > { %1533 = vmatpush3.bf16.msra.mxu1 %v1845_v41 }
  0x6e   : > { %903 = vmatmul.mubr.bf16.gmra.mrb[20].mxu0 %v1808_v19  ;;  %1534 = vmatprep.subr.bf16.mxu1 %v1846_v42 }
  0x6f   : > { %954 = vmatpush1.bf16.msra.mxu0 %v2123_v52  ;;  %912 = vmatprep.mubr.bf16.mxu0 %v1812_v20  ;;  %v330_v52 = vlaneseq }
  0x70   : > { %955 = vmatprep.subr.bf16.mxu0 %v2129_v53 }
  0x71   : > { %1535 = vmatpush3.bf16.msra.mxu1 %v1847_v43  ;;  %v331_v53 = vshrl.u32 %v330_v52, 7 }
  0x72   : > { %1536 = vmatprep.subr.bf16.mxu1 %v1848_v44 }
  0x73   : > { %956 = vmatpush1.bf16.msra.mxu0 %v2141_v56  ;;  %v332_v58 = vsub.s32 0, %v331_v53 }
  0x74   : > { %957 = vmatprep.subr.bf16.mxu0 %v2147_v57 }
  0x75   : > { %1537 = vmatpush3.bf16.msra.mxu1 %v1849_v45 }
  0x76   : > { %913 = vmatmul.mubr.bf16.gmra.mrb[24].mxu0 %v1814_v21  ;;  %1538 = vmatprep.subr.bf16.mxu1 %v1850_v46 }
  0x77   : > { %958 = vmatpush1.bf16.msra.mxu0 %v2156_v59  ;;  %922 = vmatprep.mubr.bf16.mxu0 %v1818_v22  ;;  %v328_v59 = vld [vmem:[%s2417_s2] sm:$0x3] }
  0x78   : > { %959 = vmatprep.subr.bf16.mxu0 %v2162_v60  ;;  %v336_v60 = vsub.s32 1, %v331_v53  ;;  %v2309_v61 = vrot.slane %v328_v59, %v332_v58 }
  0x79   : > { %1539 = vmatpush3.bf16.msra.mxu1 %v1851_v47 }
  0x7b   : > { %960 = vmatpush1.bf16.msra.mxu0 %v2170_v63  ;;  %v2311_v63 = vrot.slane %v328_v59, %v336_v60 }
  0x7c   : > { %961 = vmatprep.subr.bf16.mxu0 %v2177_v0 }
  0x7e   : > { %923 = vmatmul.mubr.bf16.gmra.mrb[28].mxu0 %v1820_v23 }
  0x7f   : > { %962 = vmatpush1.bf16.msra.mxu0 %v2182_v1  ;;  %965 = vmatprep.mubr.bf16.mxu0 %v1826_v24 }
  0x80   : > { %963 = vmatprep.subr.bf16.mxu0 %v2188_v2 }
  0x83   : > { %964 = vmatpush1.bf16.msra.mxu0 %v2198_v5 }
  0x86   : > { %966 = vmatmul.mubr.bf16.vlgmr.msra.gmra.mrb[0].mxu0 %v1824_v25 }
  0x87   : > { %975 = vmatprep.mubr.bf16.mxu0 %v1827_v26 }
  0x8e   : > { %976 = vmatmul.mubr.bf16.gmra.mrb[4].mxu0 %v1829_v27 }
  0x8f   : > { %985 = vmatprep.mubr.bf16.mxu0 %v1830_v28 }
  0x96   : > { %986 = vmatmul.mubr.bf16.gmra.mrb[8].mxu0 %v1832_v29 }
  0x97   : > { %995 = vmatprep.mubr.bf16.mxu0 %v1833_v30 }
  0x9e   : > { %996 = vmatmul.mubr.bf16.gmra.mrb[12].mxu0 %v1835_v31 }
 0x11e   : > { %v1007_v48 = vpop.f32.mrb[0].mxu1 }
 0x11f   : > { %v1009_v49 = vpop.f32.mrb[1].mxu1 }
 0x120   : > { %v1011_v50 = vpop.f32.mrb[2].mxu1 }
 0x121   : > { %v1013_v51 = vpop.f32.mrb[3].mxu1 }
 0x126   : > { %v1017_v54 = vpop.f32.mrb[4].mxu1 }
 0x127   : > { %v1019_v55 = vpop.f32.mrb[5].mxu1 }
 0x128   : > { %v1021_v56 = vpop.f32.mrb[6].mxu1 }
 0x129   : > { %v1023_v57 = vpop.f32.mrb[7].mxu1 }
 0x12e   : > { %v1027_v62 = vpop.f32.mrb[8].mxu1 }
 0x12f   : > { %v1029_v0 = vpop.f32.mrb[9].mxu1 }
 0x130   : > { %v1031_v1 = vpop.f32.mrb[10].mxu1 }
 0x131   : > { %v1033_v3 = vpop.f32.mrb[11].mxu1 }
 0x136   : > { %v1037_v14 = vpop.f32.mrb[12].mxu1 }
 0x137   : > { %v1039_v16 = vpop.f32.mrb[13].mxu1 }
 0x138   : > { %v1041_v19 = vpop.f32.mrb[14].mxu1 }
 0x139   : > { %v894_v2 = vpop.f32.mrb[16].mxu0  ;;  %v1043_v23 = vpop.f32.mrb[15].mxu1 }
 0x13a   : > { %v895_v4 = vadd.f32 %v894_v2, %v2309_v61  ;;  %v896_v5 = vpop.f32.mrb[17].mxu0 }
 0x13b   : > { %v897_v6 = vadd.f32 %v896_v5, %v2311_v63  ;;  %v898_v7 = vpop.f32.mrb[18].mxu0 }
 0x13c   : > { %v899_v8 = vadd.f32 %v898_v7, %v2309_v61  ;;  %v1008_v9 = vadd.f32 %v1007_v48, %v895_v4  ;;  %v900_v10 = vpop.f32.mrb[19].mxu0 }
 0x13d   : > { %v901_v11 = vadd.f32 %v900_v10, %v2311_v63  ;;  %v1010_v12 = vadd.f32 %v1009_v49, %v897_v6 }
 0x13e   : > { %v1012_v13 = vadd.f32 %v1011_v50, %v899_v8  ;;  %v1062_v17 = vmax.f32 %v1008_v9, 0.0 }
 0x13f   : > { %v1014_v15 = vadd.f32 %v1013_v51, %v901_v11  ;;  %v1063_v20 = vmax.f32 %v1010_v12, 0.0 }
 0x140   : > { %v1064_v18 = vmax.f32 %v1012_v13, 0.0 }
 0x141   : > { %v1065_v21 = vmax.f32 %v1014_v15, 0.0  ;;  %v904_v22 = vpop.f32.mrb[20].mxu0 }
 0x142   : > { %v2317_v24 = vpack.c.bf16 %v1064_v18, %v1062_v17  ;;  %v905_v25 = vadd.f32 %v904_v22, %v2309_v61  ;;  %v906_v26 = vpop.f32.mrb[21].mxu0 }
 0x143   : > { %v2320_v27 = vpack.c.bf16 %v1065_v21, %v1063_v20  ;;  %v907_v28 = vadd.f32 %v906_v26, %v2311_v63  ;;  %v908_v29 = vpop.f32.mrb[22].mxu0 }
 0x144   : > { %v909_v30 = vadd.f32 %v908_v29, %v2309_v61  ;;  %v1018_v31 = vadd.f32 %v1017_v54, %v905_v25  ;;  %v910_v32 = vpop.f32.mrb[23].mxu0 }
 0x145   : > { %v911_v33 = vadd.f32 %v910_v32, %v2311_v63  ;;  %v1020_v34 = vadd.f32 %v1019_v55, %v907_v28 }
 0x146   : > { %v1022_v35 = vadd.f32 %v1021_v56, %v909_v30  ;;  %v1066_v37 = vmax.f32 %v1018_v31, 0.0 }
 0x147   : > { %v1024_v36 = vadd.f32 %v1023_v57, %v911_v33  ;;  %v1067_v39 = vmax.f32 %v1020_v34, 0.0 }
 0x148   : > { %v1068_v38 = vmax.f32 %v1022_v35, 0.0 }
 0x149   : > { %v1069_v40 = vmax.f32 %v1024_v36, 0.0  ;;  %v914_v41 = vpop.f32.mrb[24].mxu0 }
 0x14a   : > { %v2325_v42 = vpack.c.bf16 %v1068_v38, %v1066_v37  ;;  %v915_v43 = vadd.f32 %v914_v41, %v2309_v61  ;;  %v916_v44 = vpop.f32.mrb[25].mxu0 }
 0x14b   : > { %v2328_v45 = vpack.c.bf16 %v1069_v40, %v1067_v39  ;;  %v917_v46 = vadd.f32 %v916_v44, %v2311_v63  ;;  %v918_v47 = vpop.f32.mrb[26].mxu0 }
 0x14c   : > { %v919_v48 = vadd.f32 %v918_v47, %v2309_v61  ;;  %v1028_v49 = vadd.f32 %v1027_v62, %v915_v43  ;;  %v920_v50 = vpop.f32.mrb[27].mxu0 }
 0x14d   : > { %v921_v51 = vadd.f32 %v920_v50, %v2311_v63  ;;  %v1030_v52 = vadd.f32 %v1029_v0, %v917_v46 }
 0x14e   : > { %v1032_v53 = vadd.f32 %v1031_v1, %v919_v48  ;;  %v1070_v55 = vmax.f32 %v1028_v49, 0.0 }
 0x14f   : > { %v1034_v54 = vadd.f32 %v1033_v3, %v921_v51  ;;  %v1071_v57 = vmax.f32 %v1030_v52, 0.0 }
 0x150   : > { %v1072_v56 = vmax.f32 %v1032_v53, 0.0 }
 0x151   : > { %v1073_v58 = vmax.f32 %v1034_v54, 0.0  ;;  %v924_v59 = vpop.f32.mrb[28].mxu0 }
 0x152   : > { %v2333_v60 = vpack.c.bf16 %v1072_v56, %v1070_v55  ;;  %v925_v2 = vadd.f32 %v924_v59, %v2309_v61  ;;  %v926_v4 = vpop.f32.mrb[29].mxu0 }
 0x153   : > { %v2336_v5 = vpack.c.bf16 %v1073_v58, %v1071_v57  ;;  %v927_v62 = vadd.f32 %v926_v4, %v2311_v63  ;;  %v928_v6 = vpop.f32.mrb[30].mxu0 }
 0x154   : > { %v929_v7 = vadd.f32 %v928_v6, %v2309_v61  ;;  %v1038_v0 = vadd.f32 %v1037_v14, %v925_v2  ;;  %v930_v1 = vpop.f32.mrb[31].mxu0 }
 0x155   : > { %v931_v3 = vadd.f32 %v930_v1, %v2311_v63  ;;  %v1040_v8 = vadd.f32 %v1039_v16, %v927_v62 }
 0x156   : > { %v1042_v9 = vadd.f32 %v1041_v19, %v929_v7  ;;  %v1074_v11 = vmax.f32 %v1038_v0, 0.0 }
 0x157   : > { %v1044_v10 = vadd.f32 %v1043_v23, %v931_v3  ;;  %v1075_v13 = vmax.f32 %v1040_v8, 0.0 }
 0x158   : > { %v1076_v12 = vmax.f32 %v1042_v9, 0.0 }
 0x159   : > { %v1077_v15 = vmax.f32 %v1044_v10, 0.0  ;;  %v967_v17 = vpop.f32.mrb[0].mxu0 }
 0x15a   : > { %v2341_v18 = vpack.c.bf16 %v1076_v12, %v1074_v11  ;;  %v1620_v20 = vadd.f32 %v967_v17, %v2309_v61  ;;  %v969_v21 = vpop.f32.mrb[1].mxu0 }
 0x15b   : > { %v2344_v22 = vpack.c.bf16 %v1077_v15, %v1075_v13  ;;  %v1621_v14 = vadd.f32 %v969_v21, %v2311_v63  ;;  %v971_v25 = vpop.f32.mrb[2].mxu0 }
 0x15c   : > { %v1622_v26 = vadd.f32 %v971_v25, %v2309_v61  ;;  %v973_v16 = vpop.f32.mrb[3].mxu0  ;;  %v1046_v23 = vmax.f32 %v1620_v20, 0.0 }
 0x15d   : > { %v1623_v19 = vadd.f32 %v973_v16, %v2311_v63  ;;  %v1047_v29 = vmax.f32 %v1621_v14, 0.0 }
 0x15e   : > { %v1048_v28 = vmax.f32 %v1622_v26, 0.0 }
 0x15f   : > { %v1049_v30 = vmax.f32 %v1623_v19, 0.0 }
 0x160   : > { %v1078_v31 = vpack.c.bf16 %v1048_v28, %v1046_v23 }
 0x161   : > { %v1079_v32 = vpack.c.bf16 %v1049_v30, %v1047_v29  ;;  %v977_v33 = vpop.f32.mrb[4].mxu0 }
 0x162   : > { %v1624_v34 = vadd.f32 %v977_v33, %v2309_v61  ;;  %v979_v35 = vpop.f32.mrb[5].mxu0 }
 0x163   : > { %v1625_v36 = vadd.f32 %v979_v35, %v2311_v63  ;;  %v981_v37 = vpop.f32.mrb[6].mxu0  ;;  %1261 = vmatprep.mubr.bf16.mxu1 %v1079_v32 }
 0x164   : > { %v1626_v38 = vadd.f32 %v981_v37, %v2309_v61  ;;  %v983_v39 = vpop.f32.mrb[7].mxu0  ;;  %1262 = vmatmul.mubr.bf16.vlgmr.msra.gmra.mrb[16].mxu1 %v1078_v31  ;;  %v1050_v41 = vmax.f32 %v1624_v34, 0.0 }
 0x165   : > { %v1627_v40 = vadd.f32 %v983_v39, %v2311_v63  ;;  %v1051_v44 = vmax.f32 %v1625_v36, 0.0 }
 0x166   : > { %v1052_v43 = vmax.f32 %v1626_v38, 0.0 }
 0x167   : > { %v1053_v46 = vmax.f32 %v1627_v40, 0.0 }
 0x168   : > { %v1080_v47 = vpack.c.bf16 %v1052_v43, %v1050_v41 }
 0x169   : > { %v1081_v48 = vpack.c.bf16 %v1053_v46, %v1051_v44  ;;  %v987_v49 = vpop.f32.mrb[8].mxu0 }
 0x16a   : > { %v1628_v50 = vadd.f32 %v987_v49, %v2309_v61  ;;  %v989_v51 = vpop.f32.mrb[9].mxu0 }
 0x16b   : > { %v1629_v52 = vadd.f32 %v989_v51, %v2311_v63  ;;  %v991_v53 = vpop.f32.mrb[10].mxu0  ;;  %1269 = vmatprep.mubr.bf16.mxu1 %v1081_v48 }
 0x16c   : > { %v1630_v54 = vadd.f32 %v991_v53, %v2309_v61  ;;  %v993_v55 = vpop.f32.mrb[11].mxu0  ;;  %1270 = vmatmul.mubr.bf16.gmra.mrb[20].mxu1 %v1080_v47  ;;  %v1054_v57 = vmax.f32 %v1628_v50, 0.0 }
 0x16d   : > { %v1631_v56 = vadd.f32 %v993_v55, %v2311_v63  ;;  %v1055_v59 = vmax.f32 %v1629_v52, 0.0 }
 0x16e   : > { %v1056_v58 = vmax.f32 %v1630_v54, 0.0 }
 0x16f   : > { %v1057_v2 = vmax.f32 %v1631_v56, 0.0 }
 0x170   : > { %v1082_v4 = vpack.c.bf16 %v1056_v58, %v1054_v57 }
 0x171   : > { %v1083_v62 = vpack.c.bf16 %v1057_v2, %v1055_v59  ;;  %v997_v6 = vpop.f32.mrb[12].mxu0 }
 0x172   : > { %v1632_v7 = vadd.f32 %v997_v6, %v2309_v61  ;;  %v999_v0 = vpop.f32.mrb[13].mxu0 }
 0x173   : > { %v1633_v1 = vadd.f32 %v999_v0, %v2311_v63  ;;  %v1001_v3 = vpop.f32.mrb[14].mxu0  ;;  %1277 = vmatprep.mubr.bf16.mxu1 %v1083_v62 }
 0x174   : > { %v1634_v8 = vadd.f32 %v1001_v3, %v2309_v61  ;;  %v1003_v9 = vpop.f32.mrb[15].mxu0  ;;  %1278 = vmatmul.mubr.bf16.gmra.mrb[24].mxu1 %v1082_v4  ;;  %v1058_v11 = vmax.f32 %v1632_v7, 0.0 }
 0x175   : > { %v1635_v10 = vadd.f32 %v1003_v9, %v2311_v63  ;;  %v1059_v13 = vmax.f32 %v1633_v1, 0.0  ;;  %v2373_v63 = vld [vmem:[%s2419_s4] ss:$0 sm:$0xff] }
 0x176   : > { %v1060_v12 = vmax.f32 %v1634_v8, 0.0 }
 0x177   : > { %v1061_v15 = vmax.f32 %v1635_v10, 0.0 }
 0x178   : > { %v1084_v17 = vpack.c.bf16 %v1060_v12, %v1058_v11 }
 0x179   : > { %v1085_v20 = vpack.c.bf16 %v1061_v15, %v1059_v13 }
 0x17b   : > { %1285 = vmatprep.mubr.bf16.mxu1 %v1085_v20 }
 0x17c   : > { %1286 = vmatmul.mubr.bf16.gmra.mrb[28].mxu1 %v1084_v17 }
 0x17d   : > { %1293 = vmatprep.mubr.bf16.mxu1 %v2320_v27 }
 0x184   : > { %1294 = vmatmul.mubr.bf16.gmra.mrb[32].mxu1 %v2317_v24 }
 0x185   : > { %1301 = vmatprep.mubr.bf16.mxu1 %v2328_v45 }
 0x18c   : > { %1302 = vmatmul.mubr.bf16.gmra.mrb[36].mxu1 %v2325_v42 }
 0x18d   : > { %1309 = vmatprep.mubr.bf16.mxu1 %v2336_v5 }
 0x194   : > { %1310 = vmatmul.mubr.bf16.gmra.mrb[40].mxu1 %v2333_v60 }
 0x195   : > { %1317 = vmatprep.mubr.bf16.mxu1 %v2344_v22 }
 0x19c   : > { %1318 = vmatmul.mubr.bf16.gmra.mrb[44].mxu1 %v2341_v18 }
 0x237   : > { %v1540_v61 = vpop.f32.mrb[16].mxu1 }
 0x238   : > { %v1541_v24 = vpop.f32.mrb[17].mxu1 }
 0x239   : > { %v1542_v27 = vadd.f32 %v1541_v24, %v1540_v61  ;;  %v1543_v45 = vpop.f32.mrb[18].mxu1 }
 0x23a   : > { %v1544_v42 = vpop.f32.mrb[19].mxu1 }
 0x23b   : > { %v1264_v60 = vadd.f32 %v1542_v27, %v2373_v63  ;;  %v1545_v5 = vadd.f32 %v1544_v42, %v1543_v45 }
 0x23d   : > { %1326 = vst [vmem:[%s2378_s19] sm:$0xff] %v1264_v60  ;;  %v1267_v18 = vadd.f32 %v1545_v5, %v2373_v63 }
 0x23f   : > { %1327 = vst [vmem:[%s2378_s19 + $0x8] sm:$0xff] %v1267_v18  ;;  %v1546_v21 = vpop.f32.mrb[20].mxu1 }
 0x240   : > { %v1547_v22 = vpop.f32.mrb[21].mxu1 }
 0x241   : > { %v1548_v14 = vadd.f32 %v1547_v22, %v1546_v21  ;;  %v1549_v25 = vpop.f32.mrb[22].mxu1 }
 0x242   : > { %v1550_v26 = vpop.f32.mrb[23].mxu1 }
 0x243   : > { %v1272_v16 = vadd.f32 %v1548_v14, %v2373_v63  ;;  %v1551_v19 = vadd.f32 %v1550_v26, %v1549_v25 }
 0x245   : > { %1328 = vst [vmem:[%s2378_s19 + $0x10] sm:$0xff] %v1272_v16  ;;  %v1275_v23 = vadd.f32 %v1551_v19, %v2373_v63 }
 0x247   : > { %1329 = vst [vmem:[%s2378_s19 + $0x18] sm:$0xff] %v1275_v23  ;;  %v1552_v28 = vpop.f32.mrb[24].mxu1 }
 0x248   : > { %v1553_v29 = vpop.f32.mrb[25].mxu1 }
 0x249   : > { %v1554_v30 = vadd.f32 %v1553_v29, %v1552_v28  ;;  %v1555_v31 = vpop.f32.mrb[26].mxu1 }
 0x24a   : > { %v1556_v32 = vpop.f32.mrb[27].mxu1 }
 0x24b   : > { %v1280_v33 = vadd.f32 %v1554_v30, %v2373_v63  ;;  %v1557_v34 = vadd.f32 %v1556_v32, %v1555_v31 }
 0x24d   : > { %1330 = vst [vmem:[%s2378_s19 + $0x20] sm:$0xff] %v1280_v33  ;;  %v1283_v35 = vadd.f32 %v1557_v34, %v2373_v63 }
 0x24f   : > { %1331 = vst [vmem:[%s2378_s19 + $0x28] sm:$0xff] %v1283_v35  ;;  %v1558_v36 = vpop.f32.mrb[28].mxu1 }
 0x250   : > { %v1559_v37 = vpop.f32.mrb[29].mxu1 }
 0x251   : > { %v1560_v38 = vadd.f32 %v1559_v37, %v1558_v36  ;;  %v1561_v39 = vpop.f32.mrb[30].mxu1 }
 0x252   : > { %v1562_v40 = vpop.f32.mrb[31].mxu1 }
 0x253   : > { %v1288_v41 = vadd.f32 %v1560_v38, %v2373_v63  ;;  %v1563_v43 = vadd.f32 %v1562_v40, %v1561_v39 }
 0x255   : > { %1332 = vst [vmem:[%s2378_s19 + $0x30] sm:$0xff] %v1288_v41  ;;  %v1291_v44 = vadd.f32 %v1563_v43, %v2373_v63 }
 0x257   : > { %1333 = vst [vmem:[%s2378_s19 + $0x38] sm:$0xff] %v1291_v44  ;;  %v1564_v46 = vpop.f32.mrb[32].mxu1 }
 0x258   : > { %v1565_v47 = vpop.f32.mrb[33].mxu1 }
 0x259   : > { %v1566_v48 = vadd.f32 %v1565_v47, %v1564_v46  ;;  %v1567_v49 = vpop.f32.mrb[34].mxu1 }
 0x25a   : > { %v1568_v50 = vpop.f32.mrb[35].mxu1 }
 0x25b   : > { %v1296_v51 = vadd.f32 %v1566_v48, %v2373_v63  ;;  %v1569_v52 = vadd.f32 %v1568_v50, %v1567_v49 }
 0x25d   : > { %1334 = vst [vmem:[%s2378_s19 + $0x40] sm:$0xff] %v1296_v51  ;;  %v1299_v53 = vadd.f32 %v1569_v52, %v2373_v63 }
 0x25f   : > { %1335 = vst [vmem:[%s2378_s19 + $0x48] sm:$0xff] %v1299_v53  ;;  %v1570_v54 = vpop.f32.mrb[36].mxu1 }
 0x260   : > { %v1571_v55 = vpop.f32.mrb[37].mxu1 }
 0x261   : > { %v1572_v56 = vadd.f32 %v1571_v55, %v1570_v54  ;;  %v1573_v57 = vpop.f32.mrb[38].mxu1 }
 0x262   : > { %v1574_v58 = vpop.f32.mrb[39].mxu1 }
 0x263   : > { %v1304_v59 = vadd.f32 %v1572_v56, %v2373_v63  ;;  %v1575_v2 = vadd.f32 %v1574_v58, %v1573_v57 }
 0x265   : > { %1336 = vst [vmem:[%s2378_s19 + $0x50] sm:$0xff] %v1304_v59  ;;  %v1307_v4 = vadd.f32 %v1575_v2, %v2373_v63 }
 0x267   : > { %1337 = vst [vmem:[%s2378_s19 + $0x58] sm:$0xff] %v1307_v4  ;;  %v1576_v62 = vpop.f32.mrb[40].mxu1 }
 0x268   : > { %v1577_v6 = vpop.f32.mrb[41].mxu1 }
 0x269   : > { %v1578_v7 = vadd.f32 %v1577_v6, %v1576_v62  ;;  %v1579_v0 = vpop.f32.mrb[42].mxu1 }
 0x26a   : > { %v1580_v1 = vpop.f32.mrb[43].mxu1 }
 0x26b   : > { %v1312_v3 = vadd.f32 %v1578_v7, %v2373_v63  ;;  %v1581_v8 = vadd.f32 %v1580_v1, %v1579_v0 }
 0x26d   : > { %1338 = vst [vmem:[%s2378_s19 + $0x60] sm:$0xff] %v1312_v3  ;;  %v1315_v9 = vadd.f32 %v1581_v8, %v2373_v63 }
 0x26f   : > { %1339 = vst [vmem:[%s2378_s19 + $0x68] sm:$0xff] %v1315_v9  ;;  %v1582_v10 = vpop.f32.mrb[44].mxu1 }
 0x270   : > { %v1583_v11 = vpop.f32.mrb[45].mxu1 }
 0x271   : > { %v1584_v12 = vadd.f32 %v1583_v11, %v1582_v10  ;;  %v1585_v13 = vpop.f32.mrb[46].mxu1 }
 0x272   : > { %v1586_v15 = vpop.f32.mrb[47].mxu1 }
 0x273   : > { %v1320_v17 = vadd.f32 %v1584_v12, %v2373_v63  ;;  %v1587_v20 = vadd.f32 %v1586_v15, %v1585_v13 }
 0x275   : > { %1340 = vst [vmem:[%s2378_s19 + $0x70] sm:$0xff] %v1320_v17  ;;  %v1323_v61 = vadd.f32 %v1587_v20, %v2373_v63 }
 0x277   : > { %1341 = vst [vmem:[%s2378_s19 + $0x78] sm:$0xff] %v1323_v61 }
 0x278 PF: > { %s15_s18 = sadd.s32 1, %s1858_s18  }
 0x279   : > { %p12_p4 = scmp.ge.s32.totalorder %s15_s18, 4  }
 0x27b   :  { %14 = sbr.rel (!%p12_p4) target bundleno = 1 (0x1), region = 70 }

</bundles_post_ra>
